<compile_context>
chip_gen: v6e
topology: v6e:2x2x1
jax: 0.10.0
libtpu: 0.0.40
codegen_flags: <defaults>
</compile_context>

<pallas_src>
import math

import jax
import jax.numpy as jnp
from jax.experimental import pallas as pl
from jax.experimental.pallas import tpu as pltpu

_VMEM_LIMIT_BYTES = 48 * 1024 * 1024      # conservative scoped limit; safe on v5e/v6e/v7x
_VMEM_BUDGET_FRACTION = 0.75              # keep 4 arrays x 2 pipeline bufs x tile under this
_TARGET_BLOCK_BYTES = 2 * 1024 * 1024     # ~2 MiB per array per block


def _complex_relu_kernel(real_ref, img_ref, out_real_ref, out_img_ref):
    real = real_ref[...]
    img = img_ref[...]
    # mask = 1.0 * (real >= 0): keep the float multiply (matches torch semantics,
    # incl. -0.0 for negative reals and NaN/Inf propagation from img at masked spots).
    mask = (real >= 0).astype(real.dtype)
    out_real_ref[...] = mask * real
    out_img_ref[...] = mask * img


def _choose_layout(shape):
    """Pick a lane-dense 2D view (rows, cols) of a contiguous array."""
    total = math.prod(shape)
    best = None
    for cols in (8192, 4096, 2048, 1024, 512, 256, 128):
        if total % cols == 0:
            rows = total // cols
            if best is None:
                best = (rows, cols)
            if rows >= 8:
                return rows, cols
    if best is not None:
        return best
    # Ragged trailing dim (not a multiple of 128): block must span the full last dim.
    if len(shape) >= 2 and shape[-1] > 0:
        cols = shape[-1]
        return total // cols, cols
    return total, 1


def _sublane_multiple(itemsize):
    # 8 for f32, 16 for bf16, 32 for int8/fp8.
    return max(8, 32 // max(itemsize, 1))


def _choose_tile_rows(rows, cols, itemsize):
    sub = _sublane_multiple(itemsize)
    row_bytes = cols * itemsize
    # Peak VMEM ~= 4 arrays (2 in + 2 out) x 2 pipeline buffers x tile_bytes.
    budget = int(_VMEM_LIMIT_BYTES * _VMEM_BUDGET_FRACTION)
    max_rows_vmem = max(sub, budget // (8 * row_bytes))
    target_rows = max(sub, _TARGET_BLOCK_BYTES // row_bytes)
    tile = min(max_rows_vmem, target_rows)
    if tile >= rows:
        # Whole array fits in one block.  Prefer >= 2 grid steps so v7x's two
        # TensorCores can each stream half the rows, when rows are big enough.
        if rows >= 2 * sub:
            half = pl.cdiv(rows, 2)
            return max(sub, ((half + sub - 1) // sub) * sub)
        return rows  # tiny input: one full-array block (full-dim block is legal)
    return max(sub, (tile // sub) * sub)


def complex_relu(real, img, *, in_place=False):
    """Pallas forward of complex_relu_layer_.complex_relu."""
    assert real.shape == img.shape and real.dtype == img.dtype
    orig_shape = real.shape
    itemsize = jnp.dtype(real.dtype).itemsize

    rows, cols = _choose_layout(orig_shape)
    real2 = real.reshape(rows, cols)
    img2 = img.reshape(rows, cols)

    tile_rows = _choose_tile_rows(rows, cols, itemsize)
    grid = (pl.cdiv(rows, tile_rows),)
    spec = pl.BlockSpec((tile_rows, cols), lambda i: (i, 0))

    total = rows * cols
    cost = pl.CostEstimate(
        flops=3 * total,
        transcendentals=0,
        bytes_accessed=4 * total * itemsize,
    )

    extra = {}
    if in_place:
        # Matches the in-place flavour of the torch module; requires the caller
        # to treat the inputs as donated.
        extra["input_output_aliases"] = {0: 0, 1: 1}

    out_real, out_img = pl.pallas_call(
        _complex_relu_kernel,
        out_shape=(
            jax.ShapeDtypeStruct((rows, cols), real.dtype),
            jax.ShapeDtypeStruct((rows, cols), img.dtype),
        ),
        grid=grid,
        in_specs=[spec, spec],
        out_specs=(spec, spec),
        compiler_params=pltpu.CompilerParams(
            dimension_semantics=("parallel",),
            vmem_limit_bytes=_VMEM_LIMIT_BYTES,
        ),
        cost_estimate=cost,
        **extra,
    )(real2, img2)

    return out_real.reshape(orig_shape), out_img.reshape(orig_shape)


def complex_relu_layer_forward(real, img=None):
    """Mirrors complex_relu_layer_.forward: accepts (real, img) or a tuple."""
    if img is None:
        real, img = real[0], real[1]
    return complex_relu(real, img)


if __name__ == "__main__":
    key = jax.random.PRNGKey(0)
    k1, k2 = jax.random.split(key)
    # Small node-feature shapes: 128 nodes, 128 hidden features.
    N, F = 128, 128
    real = jax.random.normal(k1, (N, F), dtype=jnp.float32)
    img = jax.random.normal(k2, (N, F), dtype=jnp.float32)

    out_real, out_img = complex_relu_layer_forward((real, img))
    jax.block_until_ready(out_real)
    jax.block_until_ready(out_img)

    # Reference check (plain JAX, same math as the torch module).
    mask = (real >= 0).astype(real.dtype)
    ref_real = mask * real
    ref_img = mask * img
    assert jnp.allclose(out_real, ref_real)
    assert jnp.allclose(out_img, ref_img)

    print("KERNEL_OK")
</pallas_src>

<mosaic_0001>
module attributes {stable_mosaic.version = 11 : i64} {
  func.func @_complex_relu_kernel(%arg0: i32, %arg1: memref<8x2048xf32, #tpu.memory_space<vmem>>, %arg2: memref<8x2048xf32, #tpu.memory_space<vmem>>, %arg3: memref<8x2048xf32, #tpu.memory_space<vmem>>, %arg4: memref<8x2048xf32, #tpu.memory_space<vmem>>) attributes {dimension_semantics = [#tpu.dimension_semantics<parallel>], iteration_bounds = array<i64: 1>, scalar_prefetch = 0 : i64, scratch_operands = 0 : i64, tpu.core_type = #tpu.core_type<tc>, window_params = [{transform_indices = @transform_0, window_bounds = array<i64: 8, 2048>}, {transform_indices = @transform_1, window_bounds = array<i64: 8, 2048>}, {transform_indices = @transform_2, window_bounds = array<i64: 8, 2048>}, {transform_indices = @transform_3, window_bounds = array<i64: 8, 2048>}]} {
    %c0 = arith.constant 0 : index
    %c0_0 = arith.constant 0 : index
    %0 = vector.load %arg1[%c0, %c0_0] : memref<8x2048xf32, #tpu.memory_space<vmem>>, vector<8x2048xf32>
    %c0_1 = arith.constant 0 : index
    %c0_2 = arith.constant 0 : index
    %1 = vector.load %arg2[%c0_1, %c0_2] : memref<8x2048xf32, #tpu.memory_space<vmem>>, vector<8x2048xf32>
    %cst = arith.constant 0.000000e+00 : f32
    %2 = vector.broadcast %cst : f32 to vector<8x2048xf32>
    %3 = arith.cmpf oge, %0, %2 : vector<8x2048xf32>
    %4 = arith.extui %3 : vector<8x2048xi1> to vector<8x2048xi32>
    %5 = arith.sitofp %4 : vector<8x2048xi32> to vector<8x2048xf32>
    %6 = arith.mulf %5, %0 : vector<8x2048xf32>
    %c0_3 = arith.constant 0 : index
    %c0_4 = arith.constant 0 : index
    %7 = vector.load %arg3[%c0_3, %c0_4] : memref<8x2048xf32, #tpu.memory_space<vmem>>, vector<8x2048xf32>
    tpu.vector_store %arg3[%c0_3, %c0_4], %6 {strides = array<i32>} : memref<8x2048xf32, #tpu.memory_space<vmem>>, vector<8x2048xf32>,
    %8 = arith.mulf %5, %1 : vector<8x2048xf32>
    %c0_5 = arith.constant 0 : index
    %c0_6 = arith.constant 0 : index
    %9 = vector.load %arg4[%c0_5, %c0_6] : memref<8x2048xf32, #tpu.memory_space<vmem>>, vector<8x2048xf32>
    tpu.vector_store %arg4[%c0_5, %c0_6], %8 {strides = array<i32>} : memref<8x2048xf32, #tpu.memory_space<vmem>>, vector<8x2048xf32>,
    return
  }
  func.func @transform_0(%arg0: i32) -> (i32, i32) {
    %c0_i32 = arith.constant 0 : i32
    %c0_i32_0 = arith.constant 0 : i32
    return %arg0, %c0_i32 : i32, i32
  }
  func.func @transform_1(%arg0: i32) -> (i32, i32) {
    %c0_i32 = arith.constant 0 : i32
    %c0_i32_0 = arith.constant 0 : i32
    return %arg0, %c0_i32 : i32, i32
  }
  func.func @transform_2(%arg0: i32) -> (i32, i32) {
    %c0_i32 = arith.constant 0 : i32
    %c0_i32_0 = arith.constant 0 : i32
    return %arg0, %c0_i32 : i32, i32
  }
  func.func @transform_3(%arg0: i32) -> (i32, i32) {
    %c0_i32 = arith.constant 0 : i32
    %c0_i32_0 = arith.constant 0 : i32
    return %arg0, %c0_i32 : i32, i32
  }
}

</mosaic_0001>

<bundles_post_ra>
// kernel: tpu_custom_call.1
= control target key start
LH: loop header
LB: loop body
LE: loop exit
PB: predicated region body
PF: predicated region fallthrough
CT: control target
= control target key end

     0   :  { %9 = vsyncpa [#allocation3], 0  ;;  %s429_s0 = inlined_call_operand.hbm [shape: f32[8,2048], index: 0, kind: input, shape index: {}]   ;;  %s430_s1 = inlined_call_operand.hbm [shape: f32[8,2048], index: 1, kind: input, shape index: {}]   ;;  %s431_s2 = inlined_call_operand.hbm [shape: f32[8,2048], index: 2, kind: output, shape index: {0}]   ;;  %s432_s3 = inlined_call_operand.hbm [shape: f32[8,2048], index: 3, kind: output, shape index: {1}]  }
   0x1   :  { %10 = vsyncpa [#allocation6], 0 }
   0x2   :  { %11 = vsyncpa [#allocation4], 0 }
   0x3   :  { %12 = vsyncpa [#allocation9], 0  ;;  %s322_s12 = smov [#allocation2]   ;;  %s323_s14 = smov [#allocation5]  }
   0x4   :  { %s19_s13 = sshll.u32 %s322_s12, 4  ;;  %s29_s15 = sshll.u32 %s323_s14, 4  ;;  %s20_s13 = int_to_ptr.vmem [resolvable:$true] %s19_s13  ;;  %s30_s15 = int_to_ptr.vmem [resolvable:$true] %s29_s15 }
   0x5   :  { %s242_s16 = scalar_lea.vmem %s20_s13, 2048  ;;  %p247_p1 = scmp.lt.s32.totalorder %s20_s13, %s20_s13 }
   0x6   :  { %p243_p0 = scmp.ne.s32.totalorder %s20_s13, %s242_s16  ;;  %p248_p2 = scmp.lt.s32.totalorder %s242_s16, %s242_s16 }
   0x8   :  { %p249_p3 = por %p248_p2, %p247_p1 }
   0xa   :  { %p250_p4 = pnand %p249_p3, %p243_p0 }
   0xc   :  { %253 = shalt.err (!%p250_p4)
}
   0xd   :  { %22 = dma.hbm_to_vmem [thread:$0]  %s429_s0, 2048, %s20_s13, [#allocation3]  }
   0xe   :  { %s262_s19 = scalar_lea.vmem %s30_s15, 2048  ;;  %p267_p6 = scmp.lt.s32.totalorder %s30_s15, %s30_s15 }
   0xf   :  { %p263_p5 = scmp.ne.s32.totalorder %s30_s15, %s262_s19  ;;  %p268_p7 = scmp.lt.s32.totalorder %s262_s19, %s262_s19 }
  0x11   :  { %p269_p8 = por %p268_p7, %p267_p6 }
  0x13   :  { %p270_p9 = pnand %p269_p8, %p263_p5 }
  0x15   :  { %273 = shalt.err (!%p270_p9)
}
  0x16   :  { %32 = dma.hbm_to_vmem [thread:$0]  %s430_s1, 2048, %s30_s15, [#allocation6]  }
  0x17   :  { %314 = dma.done.wait [#allocation3], 2048  }
  0x18   :  { %315 = vsyncadd [#allocation3], 4294965248 }
  0x19   :  { %316 = dma.done.wait [#allocation6], 2048  }
  0x1a   :  { %317 = vsyncadd [#allocation6], 4294965248  ;;  %v39_v0 = vld [vmem:[#allocation2] sm:$0xff]  ;;  %v40_v1 = vld [vmem:[#allocation2 + $0x8] sm:$0xff]  ;;  %v324_v6 = vmov 0.0   ;;  %s325_s0 = smov [#allocation7]  }
  0x1b   :  { %v41_v2 = vld [vmem:[#allocation2 + $0x10] sm:$0xff]  ;;  %vm71_vm0 = vcmp.ge.f32.partialorder %v39_v0, 0.0  ;;  %vm72_vm1 = vcmp.ge.f32.partialorder %v40_v1, 0.0  ;;  %v42_v3 = vld [vmem:[#allocation2 + $0x18] sm:$0xff]  ;;  %v43_v4 = vld [vmem:[#allocation2 + $0x20] sm:$0xff]  ;;  %s398_s1 = sshll.u32 %s325_s0, 4  ;;  %s408_s1 = int_to_ptr.vmem [resolvable:$true] %s398_s1 }
  0x1c   :  { %vm73_vm2 = vcmp.ge.f32.partialorder %v41_v2, 0.0  ;;  %v44_v5 = vld [vmem:[#allocation2 + $0x28] sm:$0xff]  ;;  %v354_v7 = vsel %vm71_vm0, 1.0, %v324_v6  ;;  %v357_v8 = vsel %vm72_vm1, 1.0, %v324_v6  ;;  %vm74_vm3 = vcmp.ge.f32.partialorder %v42_v3, 0.0  ;;  %v45_v10 = vld [vmem:[#allocation2 + $0x30] sm:$0xff]  ;;  %p279_p11 = scmp.lt.s32.totalorder %s408_s1, %s408_s1 }
  0x1d   :  { %v360_v9 = vsel %vm73_vm2, 1.0, %v324_v6  ;;  %v46_v11 = vld [vmem:[#allocation2 + $0x38] sm:$0xff]  ;;  %v119_v12 = vmul.f32 %v354_v7, %v39_v0  ;;  %v120_v13 = vmul.f32 %v357_v8, %v40_v1  ;;  %v366_v15 = vsel %vm74_vm3, 1.0, %v324_v6  ;;  %v47_v17 = vld [vmem:[#allocation2 + $0x40] sm:$0xff]  ;;  %v48_v18 = vld [vmem:[#allocation2 + $0x48] sm:$0xff]  ;;  %s326_s22 = smov [#allocation8]  }
  0x1e   :  { %v121_v14 = vmul.f32 %v360_v9, %v41_v2  ;;  %v122_v16 = vmul.f32 %v366_v15, %v42_v3  ;;  %vm75_vm4 = vcmp.ge.f32.partialorder %v43_v4, 0.0  ;;  %vm76_vm5 = vcmp.ge.f32.partialorder %v44_v5, 0.0  ;;  %v49_v19 = vld [vmem:[#allocation2 + $0x50] sm:$0xff]  ;;  %v50_v23 = vld [vmem:[#allocation2 + $0x58] sm:$0xff]  ;;  %v51_v29 = vld [vmem:[#allocation2 + $0x60] sm:$0xff]  ;;  %s199_s23 = sshll.u32 %s326_s22, 4  ;;  %s200_s23 = int_to_ptr.vmem [resolvable:$true] %s199_s23 }
  0x1f   :  { %vm77_vm6 = vcmp.ge.f32.partialorder %v45_v10, 0.0  ;;  %135 = vst [vmem:[#allocation7] sm:$0xff] %v119_v12  ;;  %136 = vst [vmem:[#allocation7 + $0x8] sm:$0xff] %v120_v13  ;;  %v370_v20 = vsel %vm75_vm4, 1.0, %v324_v6  ;;  %v373_v21 = vsel %vm76_vm5, 1.0, %v324_v6  ;;  %vm78_vm7 = vcmp.ge.f32.partialorder %v46_v11, 0.0 }
  0x20   :  { %137 = vst [vmem:[#allocation7 + $0x10] sm:$0xff] %v121_v14  ;;  %v376_v22 = vsel %vm77_vm6, 1.0, %v324_v6  ;;  %138 = vst [vmem:[#allocation7 + $0x18] sm:$0xff] %v122_v16  ;;  %v123_v24 = vmul.f32 %v370_v20, %v43_v4  ;;  %v124_v25 = vmul.f32 %v373_v21, %v44_v5  ;;  %v382_v27 = vsel %vm78_vm7, 1.0, %v324_v6  ;;  %v52_v30 = vld [vmem:[#allocation2 + $0x68] sm:$0xff]  ;;  %v53_v31 = vld [vmem:[#allocation2 + $0x70] sm:$0xff] }
  0x21   :  { %v125_v26 = vmul.f32 %v376_v22, %v45_v10  ;;  %v126_v28 = vmul.f32 %v382_v27, %v46_v11  ;;  %vm79_vm8 = vcmp.ge.f32.partialorder %v47_v17, 0.0  ;;  %vm80_vm9 = vcmp.ge.f32.partialorder %v48_v18, 0.0  ;;  %v54_v35 = vld [vmem:[#allocation2 + $0x78] sm:$0xff]  ;;  %v55_v36 = vld [vmem:[#allocation5] sm:$0xff]  ;;  %v56_v41 = vld [vmem:[#allocation5 + $0x8] sm:$0xff]  ;;  %s274_s24 = scalar_lea.vmem %s408_s1, 2048 }
  0x22   :  { %vm81_vm10 = vcmp.ge.f32.partialorder %v49_v19, 0.0  ;;  %139 = vst [vmem:[#allocation7 + $0x20] sm:$0xff] %v123_v24  ;;  %140 = vst [vmem:[#allocation7 + $0x28] sm:$0xff] %v124_v25  ;;  %v386_v32 = vsel %vm79_vm8, 1.0, %v324_v6  ;;  %v389_v33 = vsel %vm80_vm9, 1.0, %v324_v6  ;;  %vm82_vm11 = vcmp.ge.f32.partialorder %v50_v23, 0.0  ;;  %p275_p10 = scmp.ne.s32.totalorder %s408_s1, %s274_s24  ;;  %p280_p12 = scmp.lt.s32.totalorder %s274_s24, %s274_s24 }
  0x23   :  { %141 = vst [vmem:[#allocation7 + $0x30] sm:$0xff] %v125_v26  ;;  %v392_v34 = vsel %vm81_vm10, 1.0, %v324_v6  ;;  %142 = vst [vmem:[#allocation7 + $0x38] sm:$0xff] %v126_v28  ;;  %v127_v37 = vmul.f32 %v386_v32, %v47_v17  ;;  %v128_v38 = vmul.f32 %v389_v33, %v48_v18  ;;  %v224_v40 = vsel %vm82_vm11, 1.0, %v324_v6  ;;  %v57_v42 = vld [vmem:[#allocation5 + $0x10] sm:$0xff]  ;;  %v58_v43 = vld [vmem:[#allocation5 + $0x18] sm:$0xff] }
  0x24   :  { %v129_v39 = vmul.f32 %v392_v34, %v49_v19  ;;  %v130_v44 = vmul.f32 %v224_v40, %v50_v23  ;;  %vm83_vm12 = vcmp.ge.f32.partialorder %v51_v29, 0.0  ;;  %vm84_vm13 = vcmp.ge.f32.partialorder %v52_v30, 0.0  ;;  %v59_v45 = vld [vmem:[#allocation5 + $0x20] sm:$0xff]  ;;  %v60_v46 = vld [vmem:[#allocation5 + $0x28] sm:$0xff]  ;;  %v61_v47 = vld [vmem:[#allocation5 + $0x30] sm:$0xff]  ;;  %p281_p13 = por %p280_p12, %p279_p11 }
  0x25   :  { %vm85_vm14 = vcmp.ge.f32.partialorder %v53_v31, 0.0  ;;  %143 = vst [vmem:[#allocation7 + $0x40] sm:$0xff] %v127_v37  ;;  %144 = vst [vmem:[#allocation7 + $0x48] sm:$0xff] %v128_v38  ;;  %v225_v48 = vsel %vm83_vm12, 1.0, %v324_v6  ;;  %v226_v49 = vsel %vm84_vm13, 1.0, %v324_v6  ;;  %vm86_vm15 = vcmp.ge.f32.partialorder %v54_v35, 0.0 }
  0x26   :  { %145 = vst [vmem:[#allocation7 + $0x50] sm:$0xff] %v129_v39  ;;  %v227_v50 = vsel %vm85_vm14, 1.0, %v324_v6  ;;  %v62_v51 = vld [vmem:[#allocation5 + $0x38] sm:$0xff]  ;;  %v63_v52 = vld [vmem:[#allocation5 + $0x40] sm:$0xff]  ;;  %146 = vst [vmem:[#allocation7 + $0x58] sm:$0xff] %v130_v44  ;;  %v131_v53 = vmul.f32 %v225_v48, %v51_v29  ;;  %v132_v54 = vmul.f32 %v226_v49, %v52_v30  ;;  %v228_v56 = vsel %vm86_vm15, 1.0, %v324_v6  ;;  %p282_p0 = pnand %p281_p13, %p275_p10 }
  0x27   :  { %v133_v55 = vmul.f32 %v227_v50, %v53_v31  ;;  %v64_v57 = vld [vmem:[#allocation5 + $0x48] sm:$0xff]  ;;  %v65_v58 = vld [vmem:[#allocation5 + $0x50] sm:$0xff]  ;;  %v66_v59 = vld [vmem:[#allocation5 + $0x58] sm:$0xff]  ;;  %v134_v60 = vmul.f32 %v228_v56, %v54_v35  ;;  %v151_v61 = vmul.f32 %v354_v7, %v55_v36  ;;  %v152_v62 = vmul.f32 %v357_v8, %v56_v41 }
  0x28   :  { %v153_v63 = vmul.f32 %v360_v9, %v57_v42  ;;  %v67_v0 = vld [vmem:[#allocation5 + $0x60] sm:$0xff]  ;;  %v68_v1 = vld [vmem:[#allocation5 + $0x68] sm:$0xff]  ;;  %v69_v2 = vld [vmem:[#allocation5 + $0x70] sm:$0xff]  ;;  %147 = vst [vmem:[#allocation7 + $0x60] sm:$0xff] %v131_v53  ;;  %v154_v3 = vmul.f32 %v366_v15, %v58_v43  ;;  %v155_v4 = vmul.f32 %v370_v20, %v59_v45  ;;  %v156_v5 = vmul.f32 %v373_v21, %v60_v46 }
  0x29   :  { %148 = vst [vmem:[#allocation7 + $0x68] sm:$0xff] %v132_v54  ;;  %149 = vst [vmem:[#allocation7 + $0x70] sm:$0xff] %v133_v55  ;;  %v157_v6 = vmul.f32 %v376_v22, %v61_v47  ;;  %v70_v7 = vld [vmem:[#allocation5 + $0x78] sm:$0xff]  ;;  %v158_v8 = vmul.f32 %v382_v27, %v62_v51  ;;  %v159_v9 = vmul.f32 %v386_v32, %v63_v52 }
  0x2a   :  { %150 = vst [vmem:[#allocation7 + $0x78] sm:$0xff] %v134_v60  ;;  %167 = vst [vmem:[#allocation8] sm:$0xff] %v151_v61  ;;  %v160_v10 = vmul.f32 %v389_v33, %v64_v57  ;;  %v161_v11 = vmul.f32 %v392_v34, %v65_v58  ;;  %v162_v12 = vmul.f32 %v224_v40, %v66_v59 }
  0x2b   :  { %168 = vst [vmem:[#allocation8 + $0x8] sm:$0xff] %v152_v62  ;;  %169 = vst [vmem:[#allocation8 + $0x10] sm:$0xff] %v153_v63  ;;  %v163_v13 = vmul.f32 %v225_v48, %v67_v0  ;;  %v164_v14 = vmul.f32 %v226_v49, %v68_v1  ;;  %v165_v15 = vmul.f32 %v227_v50, %v69_v2 }
  0x2c   :  { %170 = vst [vmem:[#allocation8 + $0x18] sm:$0xff] %v154_v3  ;;  %171 = vst [vmem:[#allocation8 + $0x20] sm:$0xff] %v155_v4 }
  0x2d   :  { %172 = vst [vmem:[#allocation8 + $0x28] sm:$0xff] %v156_v5  ;;  %173 = vst [vmem:[#allocation8 + $0x30] sm:$0xff] %v157_v6 }
  0x2e   :  { %285 = shalt.err (!%p282_p0)
}
  0x2f   :  { %192 = dma.vmem_to_hbm [thread:$0]  %s408_s1, 2048, %s431_s2, [#allocation4]   ;;  %174 = vst [vmem:[#allocation8 + $0x38] sm:$0xff] %v158_v8  ;;  %175 = vst [vmem:[#allocation8 + $0x40] sm:$0xff] %v159_v9  ;;  %v166_v16 = vmul.f32 %v228_v56, %v70_v7 }
  0x30   :  { %176 = vst [vmem:[#allocation8 + $0x48] sm:$0xff] %v160_v10  ;;  %177 = vst [vmem:[#allocation8 + $0x50] sm:$0xff] %v161_v11  ;;  %s294_s27 = scalar_lea.vmem %s200_s23, 2048  ;;  %p299_p2 = scmp.lt.s32.totalorder %s200_s23, %s200_s23 }
  0x31   :  { %178 = vst [vmem:[#allocation8 + $0x58] sm:$0xff] %v162_v12  ;;  %179 = vst [vmem:[#allocation8 + $0x60] sm:$0xff] %v163_v13  ;;  %p295_p1 = scmp.ne.s32.totalorder %s200_s23, %s294_s27  ;;  %p300_p3 = scmp.lt.s32.totalorder %s294_s27, %s294_s27 }
  0x32   :  { %180 = vst [vmem:[#allocation8 + $0x68] sm:$0xff] %v164_v14  ;;  %181 = vst [vmem:[#allocation8 + $0x70] sm:$0xff] %v165_v15 }
  0x33   :  { %182 = vst [vmem:[#allocation8 + $0x78] sm:$0xff] %v166_v16  ;;  %p301_p4 = por %p300_p3, %p299_p2 }
  0x35   :  { %p302_p5 = pnand %p301_p4, %p295_p1 }
  0x37   :  { %305 = shalt.err (!%p302_p5)
}
  0x38   :  { %202 = dma.vmem_to_hbm [thread:$0]  %s200_s23, 2048, %s432_s3, [#allocation9]  }
  0x39   :  { %318 = dma.done.wait [#allocation4], 2048  }
  0x3a   :  { %319 = vsyncadd [#allocation4], 4294965248 }
  0x3b   :  { %320 = dma.done.wait [#allocation9], 2048  }
  0x3c   :  { %321 = vsyncadd [#allocation9], 4294965248 }
  0x3d   :  { %209 = vsyncpa [#allocation3], 1 }
  0x3e   :  { %210 = vsyncpa [#allocation6], 1 }
  0x3f   :  { %211 = vsyncpa [#allocation4], 1 }
  0x40   :  { %212 = vsyncpa [#allocation9], 1 }

</bundles_post_ra>
